<compile_context>
chip_gen: v6e
topology: v6e:2x2x1
jax: 0.10.0
libtpu: 0.0.40
codegen_flags: <defaults>
</compile_context>

<pallas_src>
import functools

import jax
import jax.numpy as jnp
from jax.experimental import pallas as pl
from jax.experimental.pallas import tpu as pltpu

GAMMA = 2.0
ALPHA = 0.25

_LANES = 128
_TARGET_BUFFER_BYTES = 2 << 20   # ~2 MiB per pipelined buffer


def _round_up(x, m):
    return ((x + m - 1) // m) * m


def _choose_tile_rows(nrows, itemsize, align):
    """Largest sublane-aligned tile <= ~2 MiB/buffer, with >= 2 grid steps when possible."""
    max_rows = max(align, (_TARGET_BUFFER_BYTES // (_LANES * itemsize)) // align * align)
    if nrows <= align:
        # Single block equal to the full row extent (always a legal block shape).
        return nrows
    # Cap at ~half the rows so the parallel grid has >= 2 steps (v7x: 2 TCs).
    half = _round_up(pl.cdiv(nrows, 2), align)
    return min(max_rows, half)


def _focal_kernel(x_ref, t_ref, o_ref, *, gamma, alpha):
    # Internal math in f32 regardless of I/O dtype.
    x = x_ref[...].astype(jnp.float32)
    t = t_ref[...].astype(jnp.float32)

    # Numerically stable BCE-with-logits, reduction='none':
    #   bce = max(x, 0) - x*t + log1p(exp(-|x|))
    bce = jnp.maximum(x, 0.0) - x * t + jnp.log1p(jnp.exp(-jnp.abs(x)))

    # pt = exp(-bce); focal = alpha * (1 - pt)**gamma * bce
    # TODO(synk): for hard {0,1} targets on v7x, pt can be rebuilt from
    # z = exp(-|x|) with a select + approx reciprocal to cut one EUP op.
    pt = jnp.exp(-bce)
    one_minus_pt = 1.0 - pt

    g = float(gamma)
    if g == 2.0:
        # Module default: explicit square -> VPU multiply, not jnp.power's
        # exp/log pair on the single EUP slot.
        mod = one_minus_pt * one_minus_pt
    elif g.is_integer() and 0.0 <= g <= 8.0:
        mod = jnp.ones_like(one_minus_pt)
        for _ in range(int(g)):
            mod = mod * one_minus_pt
    else:
        # Non-integer gamma: clamp base to avoid NaN from tiny negative 1-pt.
        mod = jnp.power(jnp.maximum(one_minus_pt, 0.0), g)

    o_ref[...] = (alpha * mod * bce).astype(o_ref.dtype)


def binary_focal_loss(logits, targets, *, gamma=GAMMA, alpha=ALPHA):
    """Elementwise binary focal loss; returns array of same shape/dtype as logits."""
    assert logits.shape == targets.shape
    orig_shape = logits.shape
    out_dtype = logits.dtype

    total = 1
    for d in orig_shape:
        total *= d

    itemsize = logits.dtype.itemsize
    t_itemsize = targets.dtype.itemsize
    align = max(8, 32 // itemsize)   # 8 sublanes f32, 16 bf16, 32 int8/fp8

    x_flat = jnp.ravel(logits)
    t_flat = jnp.ravel(targets)

    # Only pad when the flattened size is not lane-divisible; ragged *rows* are
    # handled in-grid by a clipped last block (no extra HBM passes).
    padded_total = _round_up(total, _LANES)
    needs_pad = padded_total != total
    if needs_pad:
        # TODO(synk): pass `total` via num_scalar_prefetch and mask the tail
        # lanes in-kernel to eliminate this pad/slice pass entirely.
        pad = padded_total - total
        x_flat = jnp.pad(x_flat, (0, pad))
        t_flat = jnp.pad(t_flat, (0, pad))

    nrows = padded_total // _LANES
    tile_rows = _choose_tile_rows(nrows, itemsize, align)
    grid = (pl.cdiv(nrows, tile_rows),)

    x2d = x_flat.reshape(nrows, _LANES)
    t2d = t_flat.reshape(nrows, _LANES)

    kernel = functools.partial(_focal_kernel, gamma=gamma, alpha=alpha)

    cost = pl.CostEstimate(
        flops=10 * total,
        transcendentals=3 * total,
        bytes_accessed=total * (2 * itemsize + t_itemsize),
    )

    out2d = pl.pallas_call(
        kernel,
        out_shape=jax.ShapeDtypeStruct((nrows, _LANES), out_dtype),
        grid_spec=pltpu.PrefetchScalarGridSpec(
            num_scalar_prefetch=0,
            grid=grid,
            in_specs=[
                pl.BlockSpec((tile_rows, _LANES), lambda i: (i, 0)),
                pl.BlockSpec((tile_rows, _LANES), lambda i: (i, 0)),
            ],
            out_specs=pl.BlockSpec((tile_rows, _LANES), lambda i: (i, 0)),
        ),
        compiler_params=pltpu.CompilerParams(
            dimension_semantics=("parallel",),
        ),
        cost_estimate=cost,
    )(x2d, t2d)

    if needs_pad:
        return out2d.reshape(-1)[:total].reshape(orig_shape)
    return out2d.reshape(orig_shape)


def _reference(logits, targets, gamma=GAMMA, alpha=ALPHA):
    x = logits.astype(jnp.float32)
    t = targets.astype(jnp.float32)
    bce = jnp.maximum(x, 0.0) - x * t + jnp.log1p(jnp.exp(-jnp.abs(x)))
    pt = jnp.exp(-bce)
    return (alpha * (1.0 - pt) ** gamma * bce).astype(logits.dtype)


if __name__ == "__main__":
    key = jax.random.PRNGKey(0)
    k1, k2, k3, k4 = jax.random.split(key, 4)

    # Main case: NCHW, batch=2, channels=4, spatial=16x16 (lane-divisible).
    x = jax.random.normal(k1, (2, 4, 16, 16), dtype=jnp.float32) * 3.0
    tgt = (jax.random.uniform(k2, (2, 4, 16, 16)) > 0.5).astype(jnp.float32)
    out = jax.block_until_ready(binary_focal_loss(x, tgt))
    assert out.shape == x.shape and out.dtype == x.dtype
    assert jnp.allclose(out, _reference(x, tgt), atol=1e-5, rtol=1e-5)

    # Ragged row count (3072 elems -> 24 rows, tile 16 -> clipped last block).
    x2 = jax.random.normal(k3, (3, 4, 16, 16), dtype=jnp.float32) * 3.0
    tgt2 = (jax.random.uniform(k4, (3, 4, 16, 16)) > 0.5).astype(jnp.float32)
    out2 = jax.block_until_ready(binary_focal_loss(x2, tgt2))
    assert jnp.allclose(out2, _reference(x2, tgt2), atol=1e-5, rtol=1e-5)

    # Non-lane-divisible total (105 elems) exercises the pad/slice fallback.
    x3 = jax.random.normal(k1, (5, 7, 3), dtype=jnp.float32)
    tgt3 = (jax.random.uniform(k2, (5, 7, 3)) > 0.5).astype(jnp.float32)
    out3 = jax.block_until_ready(binary_focal_loss(x3, tgt3))
    assert out3.shape == x3.shape
    assert jnp.allclose(out3, _reference(x3, tgt3), atol=1e-5, rtol=1e-5)

    print("KERNEL_OK")
</pallas_src>

<mosaic_0001>
module attributes {stable_mosaic.version = 11 : i64} {
  func.func @_focal_kernel(%arg0: i32, %arg1: memref<8x128xf32, #tpu.memory_space<vmem>>, %arg2: memref<8x128xf32, #tpu.memory_space<vmem>>, %arg3: memref<8x128xf32, #tpu.memory_space<vmem>>) attributes {dimension_semantics = [#tpu.dimension_semantics<parallel>], iteration_bounds = array<i64: 2>, scalar_prefetch = 0 : i64, scratch_operands = 0 : i64, tpu.core_type = #tpu.core_type<tc>, window_params = [{transform_indices = @transform_0, window_bounds = array<i64: 8, 128>}, {transform_indices = @transform_1, window_bounds = array<i64: 8, 128>}, {transform_indices = @transform_2, window_bounds = array<i64: 8, 128>}]} {
    %c0 = arith.constant 0 : index
    %c0_0 = arith.constant 0 : index
    %0 = vector.load %arg1[%c0, %c0_0] : memref<8x128xf32, #tpu.memory_space<vmem>>, vector<8x128xf32>
    %c0_1 = arith.constant 0 : index
    %c0_2 = arith.constant 0 : index
    %1 = vector.load %arg2[%c0_1, %c0_2] : memref<8x128xf32, #tpu.memory_space<vmem>>, vector<8x128xf32>
    %cst = arith.constant 0.000000e+00 : f32
    %2 = vector.broadcast %cst : f32 to vector<8x128xf32>
    %3 = arith.maximumf %0, %2 : vector<8x128xf32>
    %4 = arith.mulf %0, %1 : vector<8x128xf32>
    %5 = arith.subf %3, %4 : vector<8x128xf32>
    %6 = math.absf %0 : vector<8x128xf32>
    %cst_3 = arith.constant 0.000000e+00 : f32
    %7 = vector.broadcast %cst_3 : f32 to vector<8x128xf32>
    %8 = arith.subf %7, %6 : vector<8x128xf32>
    %9 = math.exp %8 : vector<8x128xf32>
    %10 = math.log1p %9 : vector<8x128xf32>
    %11 = arith.addf %5, %10 : vector<8x128xf32>
    %cst_4 = arith.constant 0.000000e+00 : f32
    %12 = vector.broadcast %cst_4 : f32 to vector<8x128xf32>
    %13 = arith.subf %12, %11 : vector<8x128xf32>
    %14 = math.exp %13 : vector<8x128xf32>
    %cst_5 = arith.constant 1.000000e+00 : f32
    %15 = vector.broadcast %cst_5 : f32 to vector<8x128xf32>
    %16 = arith.subf %15, %14 : vector<8x128xf32>
    %17 = arith.mulf %16, %16 : vector<8x128xf32>
    %cst_6 = arith.constant 2.500000e-01 : f32
    %18 = vector.broadcast %cst_6 : f32 to vector<8x128xf32>
    %19 = arith.mulf %18, %17 : vector<8x128xf32>
    %20 = arith.mulf %19, %11 : vector<8x128xf32>
    %c0_7 = arith.constant 0 : index
    %c0_8 = arith.constant 0 : index
    %21 = vector.load %arg3[%c0_7, %c0_8] : memref<8x128xf32, #tpu.memory_space<vmem>>, vector<8x128xf32>
    tpu.vector_store %arg3[%c0_7, %c0_8], %20 {strides = array<i32>} : memref<8x128xf32, #tpu.memory_space<vmem>>, vector<8x128xf32>,
    return
  }
  func.func @transform_0(%arg0: i32) -> (i32, i32) {
    %c0_i32 = arith.constant 0 : i32
    %c0_i32_0 = arith.constant 0 : i32
    return %arg0, %c0_i32 : i32, i32
  }
  func.func @transform_1(%arg0: i32) -> (i32, i32) {
    %c0_i32 = arith.constant 0 : i32
    %c0_i32_0 = arith.constant 0 : i32
    return %arg0, %c0_i32 : i32, i32
  }
  func.func @transform_2(%arg0: i32) -> (i32, i32) {
    %c0_i32 = arith.constant 0 : i32
    %c0_i32_0 = arith.constant 0 : i32
    return %arg0, %c0_i32 : i32, i32
  }
}

</mosaic_0001>

<bundles_post_ra>
// kernel: tpu_custom_call.1
= control target key start
LH: loop header
LB: loop body
LE: loop exit
PB: predicated region body
PF: predicated region fallthrough
CT: control target
= control target key end

     0   :  { %7 = vsyncpa [#allocation3], 0  ;;  %s745_s0 = inlined_call_operand.hbm [shape: f32[16,128], index: 0, kind: input, shape index: {}]   ;;  %s746_s1 = inlined_call_operand.hbm [shape: f32[16,128], index: 1, kind: input, shape index: {}]   ;;  %s747_s2 = inlined_call_operand.hbm [shape: f32[16,128], index: 2, kind: output, shape index: {}]  }
   0x1   :  { %9 = vsyncpa [#allocation3 + $0x1], 0 }
   0x2   :  { %10 = vsyncpa [#allocation6], 0 }
   0x3   :  { %12 = vsyncpa [#allocation6 + $0x1], 0 }
   0x4   :  { %13 = vsyncpa [#allocation4], 0 }
   0x5   :  { %15 = vsyncpa [#allocation4 + $0x1], 0  ;;  %s546_s9 = smov 0   ;;  %s548_s10 = smov 0  }
   0x6   :  { %s550_s11 = smov 0   ;;  %s552_s12 = smov 0  }
   0x7 LB: > { %s567_s13 = sadd.s32 4294967295, %s526_s12   ;;  %s330_s14 = sadd.s32 4294967294, %s526_s12   ;;  %s526_s12 = sphi %s552_s12, %s766_s12   ;;  %s522_s11 = sphi %s550_s11, %s765_s11   ;;  %s518_s10 = sphi %s548_s10, %s764_s10   ;;  %s514_s9 = sphi %s546_s9, %s763_s9  }
   0x8   : > { %s571_s15 = sadd.s32 1, %s526_s12   ;;  %s28_s16 = sadd.s32 1, %s522_s11 }
   0x9   : > { %s25_s17 = ssub.s32 %s526_s12, %s571_s15  ;;  %p35_p0 = scmp.ne.s32.totalorder %s522_s11, %s518_s10 }
   0xa   : > { %p26_p1 = scmp.eq.s32.totalorder %s25_s17, 0  ;;  %p36_p2 = scmp.eq.s32.totalorder %s526_s12, 0 }
   0xb   : > { %p41_p3 = scmp.ne.s32.totalorder %s518_s10, %s514_s9  ;;  %p42_p4 = scmp.eq.s32.totalorder %s567_s13, 0 }
   0xc   : > { %s583_s18 = scalar_select %p26_p1, %s522_s11, %s28_s16  }
   0xd   : > { %p585_p5 = por %p36_p2, %p35_p0  ;;  %p589_p6 = por %p42_p4, %p41_p3 }
   0xe   : > { %p91_p7 = scmp.eq.s32.totalorder %s567_s13, 1  ;;  %p97_p8 = scmp.eq.s32.totalorder %s330_s14, 1 }
   0xf   : > { %s751_s20 = scalar_select %p589_p6, 1, 0 }
  0x10   : > { %p362_p10 = scmp.lt.s32.totalorder %s526_s12, 2  ;;  %p596_p11 = por %p91_p7, %p35_p0 }
  0x11   : > { %p600_p12 = por %p97_p8, %p41_p3  ;;  %s605_s23 = sand.u32 1, %s522_s11  }
  0x12   : > { %s752_s21 = scalar_select %p596_p11, 1, 0 }
  0x13   : > { %s753_s22 = scalar_select %p600_p12, 1, 0 }
  0x14   : > { %s334_s24 = sshll.u32 %s526_s12, 7  ;;  %s333_s25 = sshll.u32 %s605_s23, 3 }
  0x15   : > { %s614_s28 = scalar_lea.hbm %s745_s0, %s334_s24  ;;  %s121_s29 = scalar_lea.vmem [#allocation2], %s333_s25 }
  0x16   : > { %s128_s30 = sshll.u32 %s121_s29, 4  ;;  %p620_p13 = pnand %p362_p10, %p585_p5  ;;  %s624_s30 = int_to_ptr.vmem [resolvable:$true] %s128_s30 }
  0x17   : > { %s118_s4 = scalar_lea.sflag [#allocation3], %s605_s23  ;;  %s402_s5 = scalar_lea.hbm %s614_s28, 128 }
  0x18   : > { %p403_p2 = scmp.ne.s32.totalorder %s614_s28, %s402_s5  ;;  %p404_p3 = pneg %p620_p13 }
  0x19   : > { %s407_s8 = scalar_lea.hbm %s745_s0, 256  ;;  %p408_p5 = scmp.lt.s32.totalorder %s614_s28, %s745_s0 }
  0x1a   : > { %p405_p4 = pnand %p404_p3, %p403_p2  ;;  %p409_p8 = scmp.lt.s32.totalorder %s407_s8, %s402_s5 }
  0x1c   : > { %p406_p7 = pneg %p405_p4  ;;  %p410_p10 = por %p409_p8, %p408_p5 }
  0x1e   : > { %p411_p9 = pnand %p410_p10, %p406_p7 }
  0x20   : > { %414 = shalt.err (!%p411_p9)
}
  0x21   : > { %s415_s17 = scalar_lea.vmem %s624_s30, 128  ;;  %s528_s19 = smov [#allocation2]  }
  0x22   : > { %p416_p0 = scmp.ne.s32.totalorder %s624_s30, %s415_s17  ;;  %s420_s26 = sshll.u32 %s528_s19, 4  ;;  %s421_s26 = int_to_ptr.vmem [resolvable:$false] %s420_s26 }
  0x23   : > { %s422_s27 = scalar_lea.vmem %s421_s26, 256  ;;  %p423_p1 = scmp.lt.s32.totalorder %s624_s30, %s421_s26 }
  0x24   : > { %p418_p2 = pnand %p416_p0, %p404_p3  ;;  %p424_p12 = scmp.lt.s32.totalorder %s422_s27, %s415_s17 }
  0x26   : > { %p419_p4 = pneg %p418_p2  ;;  %p425_p11 = por %p424_p12, %p423_p1 }
  0x28   : > { %p426_p5 = pnand %p425_p11, %p419_p4 }
  0x2a   : > { %429 = shalt.err (!%p426_p5)
}
  0x2b   : > { %354 = dma.hbm_to_vmem [thread:$0]  (!%p620_p13), %s614_s28, 128, %s624_s30, %s118_s4  }
  0x2c   : > { %p755_p9 = scmp.lt.s32.totalorder %s526_s12, 3  ;;  %p756_p0 = scmp.ge.s32.totalorder %s526_s12, 1 }
  0x2d   : > { %s666_s7 = scalar_lea.hbm %s746_s1, %s334_s24  ;;  %s139_s8 = scalar_lea.vmem [#allocation5], %s333_s25 }
  0x2e   : > { %p657_p7 = pnand %p756_p0, %p755_p9  ;;  %s146_s14 = sshll.u32 %s139_s8, 4  ;;  %s147_s14 = int_to_ptr.vmem [resolvable:$true] %s146_s14 }
  0x2f   : > { %s136_s28 = scalar_lea.sflag [#allocation6], %s605_s23  ;;  %s430_s30 = scalar_lea.hbm %s666_s7, 128 }
  0x30   : > { %s757_s29 = scalar_select %p657_p7, 1, 0 }
  0x31   : > { %p431_p11 = scmp.ne.s32.totalorder %s666_s7, %s430_s30  ;;  %s435_s17 = scalar_lea.hbm %s746_s1, 256 }
  0x32   : > { %p436_p8 = scmp.lt.s32.totalorder %s666_s7, %s746_s1  ;;  %p437_p10 = scmp.lt.s32.totalorder %s435_s17, %s430_s30 }
  0x33   : > { %p433_p12 = pnand %p431_p11, %p404_p3 }
  0x34   : > { %p438_p2 = por %p437_p10, %p436_p8 }
  0x35   : > { %p434_p1 = pneg %p433_p12 }
  0x37   : > { %p439_p4 = pnand %p438_p2, %p434_p1 }
  0x39   : > { %442 = shalt.err (!%p439_p4)
}
  0x3a   : > { %s443_s25 = scalar_lea.vmem %s147_s14, 128  ;;  %s529_s23 = smov [#allocation5]  }
  0x3b   : > { %p444_p5 = scmp.ne.s32.totalorder %s147_s14, %s443_s25  ;;  %s448_s26 = sshll.u32 %s529_s23, 4  ;;  %s449_s26 = int_to_ptr.vmem [resolvable:$false] %s448_s26 }
  0x3c   : > { %s450_s27 = scalar_lea.vmem %s449_s26, 256  ;;  %p451_p11 = scmp.lt.s32.totalorder %s147_s14, %s449_s26 }
  0x3d   : > { %p446_p9 = pnand %p444_p5, %p404_p3  ;;  %p452_p12 = scmp.lt.s32.totalorder %s450_s27, %s443_s25 }
  0x3f   : > { %p447_p0 = pneg %p446_p9  ;;  %p453_p6 = por %p452_p12, %p451_p11 }
  0x41   : > { %p454_p7 = pnand %p453_p6, %p447_p0 }
  0x43   : > { %457 = shalt.err (!%p454_p7)
}
  0x44   : > { %357 = dma.hbm_to_vmem [thread:$0]  (!%p620_p13), %s666_s7, 128, %s147_s14, %s136_s28  }
  0x45   : > { %p758_p1 = scmp.ne.s32.totalorder %s757_s29, 0 }
  0x46   : > { %s692_s5 = sand.u32 (!%p758_p1), 1, %s518_s10   ;;  %p759_p6 = scmp.ne.s32.totalorder (!%p758_p1), %s751_s20, 0 }
  0x47   : > { %155 = sbr.rel (%p758_p1) target bundleno = 160 (0xa0), region = 28  ;;  %s695_s6 = sshll.u32 (!%p758_p1), %s692_s5, 3 }
  0x48   : > { %s158_s8 = scalar_lea.sflag (!%p758_p1), [#allocation3], %s692_s5  ;;  %s161_s30 = scalar_lea.vmem (!%p758_p1), [#allocation2], %s695_s6 }
  0x4c   : > { %501 = dma.done.wait (%p759_p6), %s158_s8, 128  }
  0x4d   : > { %503 = vsyncadd (%p759_p6), %s158_s8, 4294967168  ;;  %s167_s3 = scalar_lea.sflag [#allocation6], %s692_s5  ;;  %s170_s29 = scalar_lea.vmem [#allocation5], %s695_s6 }
  0x4e   : > { %505 = dma.done.wait (%p759_p6), %s167_s3, 128  }
  0x4f   : > { %507 = vsyncadd (%p759_p6), %s167_s3, 4294967168  ;;  %v196_v0 = vld [vmem:[%s161_s30] sm:$0xff]  ;;  %v197_v7 = vld [vmem:[%s170_s29] sm:$0xff]  ;;  %s195_s20 = scalar_lea.vmem [#allocation7], %s695_s6  ;;  %s342_s14 = sshll.u32 %s567_s13, 7 }
  0x50   : > { %v201_v1 = vand.u32 2147483647, %v196_v0  ;;  %v198_v9 = vmax.f32 %v196_v0, 0.0  ;;  %v199_v10 = vmul.f32 %v197_v7, %v196_v0  ;;  %s237_s7 = sshll.u32 %s195_s20, 4  ;;  %s235_s16 = scalar_lea.hbm %s747_s2, %s342_s14  ;;  %s238_s7 = int_to_ptr.vmem [resolvable:$true] %s237_s7 }
  0x51   : > { %s224_s17 = scalar_lea.sflag [#allocation4], %s692_s5  ;;  %s458_s24 = scalar_lea.vmem %s238_s7, 128 }
  0x52   : > { %v202_v2 = vsub.f32 0.0, %v201_v1  ;;  %v200_v14 = vsub.f32 %v198_v9, %v199_v10  ;;  %p459_p13 = scmp.ne.s32.totalorder %s238_s7, %s458_s24  ;;  %p760_p3 = scmp.ne.s32.totalorder %s752_s21, 0 }
  0x53   : > { %s530_s19 = smov [#allocation7]  }
  0x54   : > { %v203_v3 = vmul.f32 1.442695, %v202_v2  ;;  %p460_p7 = pnand %p459_p13, %p760_p3  ;;  %s462_s25 = sshll.u32 %s530_s19, 4  ;;  %s463_s25 = int_to_ptr.vmem [resolvable:$false] %s462_s25 }
  0x55   : > { %s464_s23 = scalar_lea.vmem %s463_s25, 256  ;;  %p465_p10 = scmp.lt.s32.totalorder %s238_s7, %s463_s25 }
  0x56   : > { %396 = vpow2.f32 %v203_v3  ;;  %p461_p8 = pneg %p460_p7  ;;  %p466_p2 = scmp.lt.s32.totalorder %s464_s23, %s458_s24 }
  0x58   : > { %p467_p4 = por %p466_p2, %p465_p10 }
  0x5a   : > { %p468_p5 = pnand %p467_p4, %p461_p8 }
  0x63   : > { %v397_v4 = vpop.eup %396 }
  0x64   : > { %v205_v5 = vadd.f32 1.0, %v397_v4  ;;  %v208_v6 = vmul.f32 -0.5, %v397_v4  ;;  %v211_v11 = vand.u32 2147483647, %v397_v4 }
  0x66   : > { %398 = vlog2.f32 %v205_v5  ;;  %v209_v8 = vadd.f32 1.0, %v208_v6  ;;  %vm212_vm0 = vcmp.lt.f32.partialorder %v211_v11, 0.0004427343 }
  0x68   : > { %v210_v12 = vmul.f32 %v397_v4, %v209_v8 }
  0x73   : > { %v399_v13 = vpop.eup %398 }
  0x74   : > { %v207_v15 = vmul.f32 0.6931472, %v399_v13 }
  0x76   : > { %v213_v16 = vsel %vm212_vm0, %v210_v12, %v207_v15 }
  0x77   : > { %v214_v17 = vadd.f32 %v213_v16, %v200_v14 }
  0x79   : > { %v215_v18 = vsub.f32 0.0, %v214_v17 }
  0x7b   : > { %v216_v19 = vmul.f32 1.442695, %v215_v18 }
  0x7d   : > { %400 = vpow2.f32 %v216_v19 }
  0x8a   : > { %v401_v20 = vpop.eup %400 }
  0x8b   : > { %v218_v21 = vsub.f32 1.0, %v401_v20 }
  0x8d   : > { %v219_v22 = vmul.f32 %v218_v21, %v218_v21 }
  0x8f   : > { %v220_v23 = vmul.f32 0.25, %v219_v22 }
  0x91   : > { %v221_v24 = vmul.f32 %v220_v23, %v214_v17 }
  0x93   : > { %222 = vst [vmem:[%s195_s20] sm:$0xff] %v221_v24 }
  0x94   : > { %471 = shalt.err (!%p468_p5)
}
  0x95   : > { %s472_s13 = scalar_lea.hbm %s235_s16, 128  ;;  %s476_s5 = scalar_lea.hbm %s747_s2, 256 }
  0x96   : > { %p473_p9 = scmp.ne.s32.totalorder %s235_s16, %s472_s13  ;;  %p477_p12 = scmp.lt.s32.totalorder %s235_s16, %s747_s2 }
  0x97   : > { %p478_p1 = scmp.lt.s32.totalorder %s476_s5, %s472_s13 }
  0x98   : > { %p474_p0 = pnand %p473_p9, %p760_p3 }
  0x99   : > { %p479_p6 = por %p478_p1, %p477_p12 }
  0x9a   : > { %p475_p11 = pneg %p474_p0 }
  0x9c   : > { %p480_p13 = pnand %p479_p6, %p475_p11 }
  0x9e   : > { %483 = shalt.err (!%p480_p13)
}
  0x9f   : > { %349 = dma.vmem_to_hbm [thread:$0]  (%p760_p3), %s238_s7, 128, %s235_s16, %s224_s17  }
  0xa0 PF: > { %s249_s30 = sand.u32 1, %s514_s9   ;;  %p761_p7 = scmp.ne.s32.totalorder %s753_s22, 0 }
  0xa1   : > { %p762_p8 = scmp.ge.s32.totalorder %s526_s12, 2  ;;  %s250_s3 = scalar_lea.sflag [#allocation4], %s249_s30 }
  0xa3   : > { %p359_p10 = pnand %p762_p8, %p761_p7 }
  0xa5   : > { %p360_p2 = pneg %p359_p10 }
  0xa7   : > { %509 = dma.done.wait (%p360_p2), %s250_s3, 128  }
  0xa8   : > { %511 = vsyncadd (%p360_p2), %s250_s3, 4294967168  ;;  %p18_p4 = scmp.ge.s32.totalorder %s571_s15, 4   ;;  %s763_s9 = smov %s518_s10 }
  0xa9   : > { %s764_s10 = smov %s522_s11  ;;  %s765_s11 = smov %s583_s18 }
  0xaa   : > { %s766_s12 = smov %s571_s15  ;;  %20 = sbr.rel (!%p18_p4) target bundleno = 7 (0x7), region = 86 }
  0xaf   :  { %255 = vsyncpa [#allocation3], 1 }
  0xb0   :  { %257 = vsyncpa [#allocation3 + $0x1], 1 }
  0xb1   :  { %258 = vsyncpa [#allocation6], 1 }
  0xb2   :  { %260 = vsyncpa [#allocation6 + $0x1], 1 }
  0xb3   :  { %261 = vsyncpa [#allocation4], 1 }
  0xb4   :  { %263 = vsyncpa [#allocation4 + $0x1], 1 }

</bundles_post_ra>
